<compile_context>
chip_gen: v6e
topology: v6e:2x2x1
jax: 0.10.0
libtpu: 0.0.40
codegen_flags: <defaults>
</compile_context>

<pallas_src>
import functools

import jax
import jax.numpy as jnp
from jax.experimental import pallas as pl
from jax.experimental.pallas import tpu as pltpu


def _gat_fused_kernel(h_ref, hT_ref, wp_ref, asrcT_ref, adst_ref, adj_ref, o_ref,
                      *, num_heads, out_dim, tq, mxu_dtype):
    """All heads in one grid step; grid axis 0 = destination-row tiles."""

    def mxu_dot(x, y):
        return jnp.dot(x.astype(mxu_dtype), y.astype(mxu_dtype),
                       preferred_element_type=jnp.float32)

    h_all = h_ref[...]                                    # (N, in_dim)

    # Fused projection for all heads: one wide lane-dense MXU matmul.
    z_all = mxu_dot(h_all, wp_ref[...])                   # (N, H*out_dim)

    # Attention terms folded into matmuls:
    #   el_T[h, j] = a_src_h . z_j    (source term, rows = heads, lanes = sources)
    #   er[d, h]   = a_dst_h . z_d    (dest term for this tile of dst rows)
    el_T = mxu_dot(asrcT_ref[...], hT_ref[...])           # (H, N)
    row0 = pl.multiple_of(pl.program_id(0) * tq, tq)
    h_dst = h_ref[pl.ds(row0, tq), :]                     # (Tq, in_dim)
    er = mxu_dot(h_dst, adst_ref[...])                    # (Tq, H)

    # Adjacency mask, hoisted once per tile and reused by all heads.
    mask = adj_ref[...] > 0                               # (Tq, N)
    neg = jnp.float32(-1e30)

    outs = []
    for hd in range(num_heads):                           # small static H -> unrolled
        s = er[:, hd:hd + 1] + el_T[hd:hd + 1, :]         # (Tq, N)
        s = jnp.where(s > 0, s, 0.01 * s)                 # leaky_relu(0.01)
        s = jnp.where(mask, s, neg)
        s_max = jnp.max(s, axis=-1, keepdims=True)
        p = jnp.where(mask, jnp.exp(s - s_max), 0.0)
        denom = jnp.sum(p, axis=-1, keepdims=True)
        denom = jnp.where(denom == 0.0, 1.0, denom)       # no in-edges -> output 0
        alpha = p * pl.reciprocal(denom, approx=True)     # EUP slot, ~free
        z_h = z_all[:, hd * out_dim:(hd + 1) * out_dim]   # (N, out_dim)
        outs.append(mxu_dot(alpha, z_h))                  # (Tq, out_dim)

    # Single lane-dense store, already in torch.cat(head_outs, dim=1) layout.
    o_ref[...] = jnp.concatenate(outs, axis=1).astype(o_ref.dtype)


def _pick_row_tile(n, cap=256):
    """Largest destination-row tile <= cap that divides N (multiple of 8)."""
    if n <= cap:
        return n
    for t in (256, 128, 64, 32, 16, 8):
        if t <= cap and n % t == 0:
            return t
    # TODO(synk): pad ragged node counts up to a multiple of 8 instead of one big tile.
    return n


def multi_head_gat(h, W, a, adj, merge="cat", *, mxu_dtype=jnp.float32, tq_cap=256):
    """h:(N,in) W:(H,out,in) a:(H,2,out) adj:(N,N) -> (N, H*out) for merge='cat'."""
    N, in_dim = h.shape
    H, out_dim, _ = W.shape
    F = H * out_dim

    # Wrapper-side layout plumbing (free): pre-transpose/stack the projection,
    # fold the attention vectors into the projection weights, pre-transpose h.
    Wp = jnp.transpose(W, (2, 0, 1)).reshape(in_dim, F)        # (in, H*out): cols h*out+o = W[h,o,:]
    a_srcT = jnp.einsum('hoi,ho->hi', W, a[:, 0])              # (H, in):  W_h^T a_src_h
    a_dst = jnp.einsum('hoi,ho->ih', W, a[:, 1])               # (in, H):  W_h^T a_dst_h
    hT = h.T                                                   # (in, N)

    # Destination-row tiling; the full source axis stays resident in VMEM.
    # For large N size tq to the VMEM budget (v7x: 64 MiB physical / 32 MiB scoped;
    # v5e/v6e can go bigger by raising vmem_limit_bytes). adj can additionally be
    # passed as int8/bf16 to cut HBM traffic (matters most on v5e).
    tq = _pick_row_tile(N, tq_cap)
    grid = (N // tq,)

    kernel = functools.partial(_gat_fused_kernel, num_heads=H, out_dim=out_dim,
                               tq=tq, mxu_dtype=mxu_dtype)

    out = pl.pallas_call(
        kernel,
        out_shape=jax.ShapeDtypeStruct((N, F), jnp.float32),
        grid=grid,
        in_specs=[
            pl.BlockSpec((N, in_dim), lambda i: (0, 0)),   # h       (full source axis)
            pl.BlockSpec((in_dim, N), lambda i: (0, 0)),   # h^T
            pl.BlockSpec((in_dim, F), lambda i: (0, 0)),   # fused projection weight
            pl.BlockSpec((H, in_dim), lambda i: (0, 0)),   # folded src attn vectors
            pl.BlockSpec((in_dim, H), lambda i: (0, 0)),   # folded dst attn vectors
            pl.BlockSpec((tq, N), lambda i: (i, 0)),       # adjacency rows for tile i
        ],
        out_specs=pl.BlockSpec((tq, F), lambda i: (i, 0)),  # lane-dense final layout
        compiler_params=pltpu.CompilerParams(
            dimension_semantics=("parallel",),   # dst tiles shard across TCs on v7x
        ),
    )(h, hT, Wp, a_srcT, a_dst, adj)

    if merge == "cat":
        return out                        # == torch.cat(head_outs, dim=1)
    # torch.mean(torch.stack(head_outs)) is a scalar mean over every element.
    return jnp.mean(out)


def _reference(h, W, a, adj):
    """Pure-JAX reference for correctness check."""
    outs = []
    for hd in range(W.shape[0]):
        z = h @ W[hd].T
        el = z @ a[hd, 0]          # (N,) src term
        er = z @ a[hd, 1]          # (N,) dst term
        s = er[:, None] + el[None, :]
        s = jnp.where(s > 0, s, 0.01 * s)
        mask = adj > 0.0
        s_m = jnp.where(mask, s, -1e30)
        p = jnp.exp(s_m - jnp.max(s_m, axis=-1, keepdims=True))
        p = jnp.where(mask, p, 0.0)
        denom = jnp.sum(p, axis=-1, keepdims=True)
        denom = jnp.where(denom == 0.0, 1.0, denom)
        alpha = p / denom
        outs.append(alpha @ z)
    return jnp.concatenate(outs, axis=1)


def _xavier_normal(key, shape, gain):
    fan_out, fan_in = shape[-2], shape[-1]
    std = gain * (2.0 / (fan_in + fan_out)) ** 0.5
    return std * jax.random.normal(key, shape, dtype=jnp.float32)


if __name__ == "__main__":
    # Small, module-consistent shapes.
    N, in_dim, out_dim, num_heads = 16, 8, 8, 4
    gain = 2.0 ** 0.5  # nn.init.calculate_gain('relu')

    key = jax.random.PRNGKey(0)
    k_h, k_adj, k_w, k_a = jax.random.split(key, 4)

    # node features
    h = jax.random.normal(k_h, (N, in_dim), dtype=jnp.float32)

    # random adjacency (rows = destination), with self-loops so every node has >=1 in-edge
    adj = (jax.random.uniform(k_adj, (N, N)) < 0.3).astype(jnp.float32)
    adj = jnp.maximum(adj, jnp.eye(N, dtype=jnp.float32))

    # per-head parameters, xavier_normal with relu gain (as in reset_parameters)
    kws = jax.random.split(k_w, num_heads)
    kas = jax.random.split(k_a, num_heads)
    W = jnp.stack([_xavier_normal(kws[i], (out_dim, in_dim), gain) for i in range(num_heads)])
    # attn_fc.weight has shape (1, 2*out_dim); split into (src, dst) halves -> (H, 2, out_dim)
    a_full = jnp.stack([_xavier_normal(kas[i], (1, 2 * out_dim), gain) for i in range(num_heads)])
    a = jnp.stack([a_full[:, 0, :out_dim], a_full[:, 0, out_dim:]], axis=1)

    out = multi_head_gat(h, W, a, adj, merge="cat")
    out = jax.block_until_ready(out)

    ref = _reference(h, W, a, adj)
    assert out.shape == (N, num_heads * out_dim)
    # Tolerance loosened slightly vs exact-divide reference because the kernel uses
    # pl.reciprocal(approx=True) for the softmax normalization (~1e-3 relative).
    assert jnp.allclose(out, ref, atol=2e-3, rtol=5e-3), "mismatch vs reference"

    print("KERNEL_OK")
</pallas_src>

<mosaic_0001>
module attributes {stable_mosaic.version = 11 : i64} {
  func.func @_gat_fused_kernel(%arg0: i32, %arg1: memref<16x8xf32, #tpu.memory_space<vmem>>, %arg2: memref<8x16xf32, #tpu.memory_space<vmem>>, %arg3: memref<8x32xf32, #tpu.memory_space<vmem>>, %arg4: memref<4x8xf32, #tpu.memory_space<vmem>>, %arg5: memref<8x4xf32, #tpu.memory_space<vmem>>, %arg6: memref<16x16xf32, #tpu.memory_space<vmem>>, %arg7: memref<16x32xf32, #tpu.memory_space<vmem>>) attributes {dimension_semantics = [#tpu.dimension_semantics<parallel>], iteration_bounds = array<i64: 1>, scalar_prefetch = 0 : i64, scratch_operands = 0 : i64, tpu.core_type = #tpu.core_type<tc>, window_params = [{pipeline_mode = #tpu.pipeline_mode<synchronous>, transform_indices = @transform_0, window_bounds = array<i64: 16, 8>}, {pipeline_mode = #tpu.pipeline_mode<synchronous>, transform_indices = @transform_1, window_bounds = array<i64: 8, 16>}, {pipeline_mode = #tpu.pipeline_mode<synchronous>, transform_indices = @transform_2, window_bounds = array<i64: 8, 32>}, {pipeline_mode = #tpu.pipeline_mode<synchronous>, transform_indices = @transform_3, window_bounds = array<i64: 4, 8>}, {pipeline_mode = #tpu.pipeline_mode<synchronous>, transform_indices = @transform_4, window_bounds = array<i64: 8, 4>}, {transform_indices = @transform_5, window_bounds = array<i64: 16, 16>}, {transform_indices = @transform_6, window_bounds = array<i64: 16, 32>}]} {
    %c0 = arith.constant 0 : index
    %c0_0 = arith.constant 0 : index
    %0 = vector.load %arg1[%c0, %c0_0] : memref<16x8xf32, #tpu.memory_space<vmem>>, vector<16x8xf32>
    %c0_1 = arith.constant 0 : index
    %c0_2 = arith.constant 0 : index
    %1 = vector.load %arg3[%c0_1, %c0_2] : memref<8x32xf32, #tpu.memory_space<vmem>>, vector<8x32xf32>
    %cst = arith.constant dense<0.000000e+00> : vector<16x32xf32>
    %2 = tpu.matmul %0, %1, %cst {dimension_numbers = #tpu.dot_dimension_numbers<[1], [0], [0], [1], [0, 0, 1, 1], [], []>} : vector<16x8xf32>, vector<8x32xf32>, vector<16x32xf32> -> vector<16x32xf32>
    %c0_3 = arith.constant 0 : index
    %c0_4 = arith.constant 0 : index
    %3 = vector.load %arg4[%c0_3, %c0_4] : memref<4x8xf32, #tpu.memory_space<vmem>>, vector<4x8xf32>
    %c0_5 = arith.constant 0 : index
    %c0_6 = arith.constant 0 : index
    %4 = vector.load %arg2[%c0_5, %c0_6] : memref<8x16xf32, #tpu.memory_space<vmem>>, vector<8x16xf32>
    %cst_7 = arith.constant dense<0.000000e+00> : vector<4x16xf32>
    %5 = tpu.matmul %3, %4, %cst_7 {dimension_numbers = #tpu.dot_dimension_numbers<[1], [0], [0], [1], [0, 0, 1, 1], [], []>} : vector<4x8xf32>, vector<8x16xf32>, vector<4x16xf32> -> vector<4x16xf32>
    %c16_i32 = arith.constant 16 : i32
    %6 = arith.muli %arg0, %c16_i32 : i32
    %7 = tpu.assume_multiple %6, 16 : i32
    %8 = arith.index_cast %7 : i32 to index
    %c0_8 = arith.constant 0 : index
    %9 = vector.load %arg1[%8, %c0_8] : memref<16x8xf32, #tpu.memory_space<vmem>>, vector<16x8xf32>
    %c0_9 = arith.constant 0 : index
    %c0_10 = arith.constant 0 : index
    %10 = vector.load %arg5[%c0_9, %c0_10] : memref<8x4xf32, #tpu.memory_space<vmem>>, vector<8x4xf32>
    %cst_11 = arith.constant dense<0.000000e+00> : vector<16x4xf32>
    %11 = tpu.matmul %9, %10, %cst_11 {dimension_numbers = #tpu.dot_dimension_numbers<[1], [0], [0], [1], [0, 0, 1, 1], [], []>} : vector<16x8xf32>, vector<8x4xf32>, vector<16x4xf32> -> vector<16x4xf32>
    %c0_12 = arith.constant 0 : index
    %c0_13 = arith.constant 0 : index
    %12 = vector.load %arg6[%c0_12, %c0_13] : memref<16x16xf32, #tpu.memory_space<vmem>>, vector<16x16xf32>
    %cst_14 = arith.constant 0.000000e+00 : f32
    %13 = vector.broadcast %cst_14 : f32 to vector<16x16xf32>
    %14 = arith.cmpf ogt, %12, %13 : vector<16x16xf32>
    %15 = vector.extract_strided_slice %11 {offsets = [0, 0], sizes = [16, 1], strides = [1, 1]} : vector<16x4xf32> to vector<16x1xf32>
    %16 = vector.extract_strided_slice %5 {offsets = [0, 0], sizes = [1, 16], strides = [1, 1]} : vector<4x16xf32> to vector<1x16xf32>
    %17 = vector.broadcast %15 : vector<16x1xf32> to vector<16x16xf32>
    %18 = vector.broadcast %16 : vector<1x16xf32> to vector<16x16xf32>
    %19 = arith.addf %17, %18 : vector<16x16xf32>
    %cst_15 = arith.constant 0.000000e+00 : f32
    %20 = vector.broadcast %cst_15 : f32 to vector<16x16xf32>
    %21 = arith.cmpf ogt, %19, %20 : vector<16x16xf32>
    %cst_16 = arith.constant 0.00999999977 : f32
    %22 = vector.broadcast %cst_16 : f32 to vector<16x16xf32>
    %23 = arith.mulf %22, %19 : vector<16x16xf32>
    %24 = arith.select %21, %19, %23 : vector<16x16xi1>, vector<16x16xf32>
    %cst_17 = arith.constant -1.000000e+30 : f32
    %25 = vector.broadcast %cst_17 : f32 to vector<16x16xf32>
    %26 = arith.select %14, %24, %25 : vector<16x16xi1>, vector<16x16xf32>
    %cst_18 = arith.constant dense<0xFF800000> : vector<16xf32>
    %27 = vector.multi_reduction <maximumf>, %26, %cst_18 [1] : vector<16x16xf32> to vector<16xf32>
    %28 = vector.shape_cast %27 : vector<16xf32> to vector<16x1xf32>
    %29 = vector.broadcast %28 : vector<16x1xf32> to vector<16x16xf32>
    %30 = arith.subf %26, %29 : vector<16x16xf32>
    %31 = math.exp %30 : vector<16x16xf32>
    %cst_19 = arith.constant 0.000000e+00 : f32
    %32 = vector.broadcast %cst_19 : f32 to vector<16x16xf32>
    %33 = arith.select %14, %31, %32 : vector<16x16xi1>, vector<16x16xf32>
    %cst_20 = arith.constant dense<0.000000e+00> : vector<16xf32>
    %34 = vector.multi_reduction <add>, %33, %cst_20 [1] : vector<16x16xf32> to vector<16xf32>
    %35 = vector.shape_cast %34 : vector<16xf32> to vector<16x1xf32>
    %cst_21 = arith.constant 0.000000e+00 : f32
    %36 = vector.broadcast %cst_21 : f32 to vector<16x1xf32>
    %37 = arith.cmpf oeq, %35, %36 : vector<16x1xf32>
    %cst_22 = arith.constant 1.000000e+00 : f32
    %38 = vector.broadcast %cst_22 : f32 to vector<16x1xf32>
    %39 = arith.select %37, %38, %35 : vector<16x1xi1>, vector<16x1xf32>
    %40 = tpu.reciprocal %39 {approx = true} : vector<16x1xf32> -> vector<16x1xf32>
    %41 = vector.broadcast %40 : vector<16x1xf32> to vector<16x16xf32>
    %42 = arith.mulf %33, %41 : vector<16x16xf32>
    %43 = vector.extract_strided_slice %2 {offsets = [0, 0], sizes = [16, 8], strides = [1, 1]} : vector<16x32xf32> to vector<16x8xf32>
    %cst_23 = arith.constant dense<0.000000e+00> : vector<16x8xf32>
    %44 = tpu.matmul %42, %43, %cst_23 {dimension_numbers = #tpu.dot_dimension_numbers<[1], [0], [0], [1], [0, 0, 1, 1], [], []>} : vector<16x16xf32>, vector<16x8xf32>, vector<16x8xf32> -> vector<16x8xf32>
    %45 = vector.extract_strided_slice %11 {offsets = [0, 1], sizes = [16, 1], strides = [1, 1]} : vector<16x4xf32> to vector<16x1xf32>
    %46 = vector.extract_strided_slice %5 {offsets = [1, 0], sizes = [1, 16], strides = [1, 1]} : vector<4x16xf32> to vector<1x16xf32>
    %47 = vector.broadcast %45 : vector<16x1xf32> to vector<16x16xf32>
    %48 = vector.broadcast %46 : vector<1x16xf32> to vector<16x16xf32>
    %49 = arith.addf %47, %48 : vector<16x16xf32>
    %cst_24 = arith.constant 0.000000e+00 : f32
    %50 = vector.broadcast %cst_24 : f32 to vector<16x16xf32>
    %51 = arith.cmpf ogt, %49, %50 : vector<16x16xf32>
    %cst_25 = arith.constant 0.00999999977 : f32
    %52 = vector.broadcast %cst_25 : f32 to vector<16x16xf32>
    %53 = arith.mulf %52, %49 : vector<16x16xf32>
    %54 = arith.select %51, %49, %53 : vector<16x16xi1>, vector<16x16xf32>
    %cst_26 = arith.constant -1.000000e+30 : f32
    %55 = vector.broadcast %cst_26 : f32 to vector<16x16xf32>
    %56 = arith.select %14, %54, %55 : vector<16x16xi1>, vector<16x16xf32>
    %cst_27 = arith.constant dense<0xFF800000> : vector<16xf32>
    %57 = vector.multi_reduction <maximumf>, %56, %cst_27 [1] : vector<16x16xf32> to vector<16xf32>
    %58 = vector.shape_cast %57 : vector<16xf32> to vector<16x1xf32>
    %59 = vector.broadcast %58 : vector<16x1xf32> to vector<16x16xf32>
    %60 = arith.subf %56, %59 : vector<16x16xf32>
    %61 = math.exp %60 : vector<16x16xf32>
    %cst_28 = arith.constant 0.000000e+00 : f32
    %62 = vector.broadcast %cst_28 : f32 to vector<16x16xf32>
    %63 = arith.select %14, %61, %62 : vector<16x16xi1>, vector<16x16xf32>
    %cst_29 = arith.constant dense<0.000000e+00> : vector<16xf32>
    %64 = vector.multi_reduction <add>, %63, %cst_29 [1] : vector<16x16xf32> to vector<16xf32>
    %65 = vector.shape_cast %64 : vector<16xf32> to vector<16x1xf32>
    %cst_30 = arith.constant 0.000000e+00 : f32
    %66 = vector.broadcast %cst_30 : f32 to vector<16x1xf32>
    %67 = arith.cmpf oeq, %65, %66 : vector<16x1xf32>
    %cst_31 = arith.constant 1.000000e+00 : f32
    %68 = vector.broadcast %cst_31 : f32 to vector<16x1xf32>
    %69 = arith.select %67, %68, %65 : vector<16x1xi1>, vector<16x1xf32>
    %70 = tpu.reciprocal %69 {approx = true} : vector<16x1xf32> -> vector<16x1xf32>
    %71 = vector.broadcast %70 : vector<16x1xf32> to vector<16x16xf32>
    %72 = arith.mulf %63, %71 : vector<16x16xf32>
    %73 = vector.extract_strided_slice %2 {offsets = [0, 8], sizes = [16, 8], strides = [1, 1]} : vector<16x32xf32> to vector<16x8xf32>
    %cst_32 = arith.constant dense<0.000000e+00> : vector<16x8xf32>
    %74 = tpu.matmul %72, %73, %cst_32 {dimension_numbers = #tpu.dot_dimension_numbers<[1], [0], [0], [1], [0, 0, 1, 1], [], []>} : vector<16x16xf32>, vector<16x8xf32>, vector<16x8xf32> -> vector<16x8xf32>
    %75 = vector.extract_strided_slice %11 {offsets = [0, 2], sizes = [16, 1], strides = [1, 1]} : vector<16x4xf32> to vector<16x1xf32>
    %76 = vector.extract_strided_slice %5 {offsets = [2, 0], sizes = [1, 16], strides = [1, 1]} : vector<4x16xf32> to vector<1x16xf32>
    %77 = vector.broadcast %75 : vector<16x1xf32> to vector<16x16xf32>
    %78 = vector.broadcast %76 : vector<1x16xf32> to vector<16x16xf32>
    %79 = arith.addf %77, %78 : vector<16x16xf32>
    %cst_33 = arith.constant 0.000000e+00 : f32
    %80 = vector.broadcast %cst_33 : f32 to vector<16x16xf32>
    %81 = arith.cmpf ogt, %79, %80 : vector<16x16xf32>
    %cst_34 = arith.constant 0.00999999977 : f32
    %82 = vector.broadcast %cst_34 : f32 to vector<16x16xf32>
    %83 = arith.mulf %82, %79 : vector<16x16xf32>
    %84 = arith.select %81, %79, %83 : vector<16x16xi1>, vector<16x16xf32>
    %cst_35 = arith.constant -1.000000e+30 : f32
    %85 = vector.broadcast %cst_35 : f32 to vector<16x16xf32>
    %86 = arith.select %14, %84, %85 : vector<16x16xi1>, vector<16x16xf32>
    %cst_36 = arith.constant dense<0xFF800000> : vector<16xf32>
    %87 = vector.multi_reduction <maximumf>, %86, %cst_36 [1] : vector<16x16xf32> to vector<16xf32>
    %88 = vector.shape_cast %87 : vector<16xf32> to vector<16x1xf32>
    %89 = vector.broadcast %88 : vector<16x1xf32> to vector<16x16xf32>
    %90 = arith.subf %86, %89 : vector<16x16xf32>
    %91 = math.exp %90 : vector<16x16xf32>
    %cst_37 = arith.constant 0.000000e+00 : f32
    %92 = vector.broadcast %cst_37 : f32 to vector<16x16xf32>
    %93 = arith.select %14, %91, %92 : vector<16x16xi1>, vector<16x16xf32>
    %cst_38 = arith.constant dense<0.000000e+00> : vector<16xf32>
    %94 = vector.multi_reduction <add>, %93, %cst_38 [1] : vector<16x16xf32> to vector<16xf32>
    %95 = vector.shape_cast %94 : vector<16xf32> to vector<16x1xf32>
    %cst_39 = arith.constant 0.000000e+00 : f32
    %96 = vector.broadcast %cst_39 : f32 to vector<16x1xf32>
    %97 = arith.cmpf oeq, %95, %96 : vector<16x1xf32>
    %cst_40 = arith.constant 1.000000e+00 : f32
    %98 = vector.broadcast %cst_40 : f32 to vector<16x1xf32>
    %99 = arith.select %97, %98, %95 : vector<16x1xi1>, vector<16x1xf32>
    %100 = tpu.reciprocal %99 {approx = true} : vector<16x1xf32> -> vector<16x1xf32>
    %101 = vector.broadcast %100 : vector<16x1xf32> to vector<16x16xf32>
    %102 = arith.mulf %93, %101 : vector<16x16xf32>
    %103 = vector.extract_strided_slice %2 {offsets = [0, 16], sizes = [16, 8], strides = [1, 1]} : vector<16x32xf32> to vector<16x8xf32>
    %cst_41 = arith.constant dense<0.000000e+00> : vector<16x8xf32>
    %104 = tpu.matmul %102, %103, %cst_41 {dimension_numbers = #tpu.dot_dimension_numbers<[1], [0], [0], [1], [0, 0, 1, 1], [], []>} : vector<16x16xf32>, vector<16x8xf32>, vector<16x8xf32> -> vector<16x8xf32>
    %105 = vector.extract_strided_slice %11 {offsets = [0, 3], sizes = [16, 1], strides = [1, 1]} : vector<16x4xf32> to vector<16x1xf32>
    %106 = vector.extract_strided_slice %5 {offsets = [3, 0], sizes = [1, 16], strides = [1, 1]} : vector<4x16xf32> to vector<1x16xf32>
    %107 = vector.broadcast %105 : vector<16x1xf32> to vector<16x16xf32>
    %108 = vector.broadcast %106 : vector<1x16xf32> to vector<16x16xf32>
    %109 = arith.addf %107, %108 : vector<16x16xf32>
    %cst_42 = arith.constant 0.000000e+00 : f32
    %110 = vector.broadcast %cst_42 : f32 to vector<16x16xf32>
    %111 = arith.cmpf ogt, %109, %110 : vector<16x16xf32>
    %cst_43 = arith.constant 0.00999999977 : f32
    %112 = vector.broadcast %cst_43 : f32 to vector<16x16xf32>
    %113 = arith.mulf %112, %109 : vector<16x16xf32>
    %114 = arith.select %111, %109, %113 : vector<16x16xi1>, vector<16x16xf32>
    %cst_44 = arith.constant -1.000000e+30 : f32
    %115 = vector.broadcast %cst_44 : f32 to vector<16x16xf32>
    %116 = arith.select %14, %114, %115 : vector<16x16xi1>, vector<16x16xf32>
    %cst_45 = arith.constant dense<0xFF800000> : vector<16xf32>
    %117 = vector.multi_reduction <maximumf>, %116, %cst_45 [1] : vector<16x16xf32> to vector<16xf32>
    %118 = vector.shape_cast %117 : vector<16xf32> to vector<16x1xf32>
    %119 = vector.broadcast %118 : vector<16x1xf32> to vector<16x16xf32>
    %120 = arith.subf %116, %119 : vector<16x16xf32>
    %121 = math.exp %120 : vector<16x16xf32>
    %cst_46 = arith.constant 0.000000e+00 : f32
    %122 = vector.broadcast %cst_46 : f32 to vector<16x16xf32>
    %123 = arith.select %14, %121, %122 : vector<16x16xi1>, vector<16x16xf32>
    %cst_47 = arith.constant dense<0.000000e+00> : vector<16xf32>
    %124 = vector.multi_reduction <add>, %123, %cst_47 [1] : vector<16x16xf32> to vector<16xf32>
    %125 = vector.shape_cast %124 : vector<16xf32> to vector<16x1xf32>
    %cst_48 = arith.constant 0.000000e+00 : f32
    %126 = vector.broadcast %cst_48 : f32 to vector<16x1xf32>
    %127 = arith.cmpf oeq, %125, %126 : vector<16x1xf32>
    %cst_49 = arith.constant 1.000000e+00 : f32
    %128 = vector.broadcast %cst_49 : f32 to vector<16x1xf32>
    %129 = arith.select %127, %128, %125 : vector<16x1xi1>, vector<16x1xf32>
    %130 = tpu.reciprocal %129 {approx = true} : vector<16x1xf32> -> vector<16x1xf32>
    %131 = vector.broadcast %130 : vector<16x1xf32> to vector<16x16xf32>
    %132 = arith.mulf %123, %131 : vector<16x16xf32>
    %133 = vector.extract_strided_slice %2 {offsets = [0, 24], sizes = [16, 8], strides = [1, 1]} : vector<16x32xf32> to vector<16x8xf32>
    %cst_50 = arith.constant dense<0.000000e+00> : vector<16x8xf32>
    %134 = tpu.matmul %132, %133, %cst_50 {dimension_numbers = #tpu.dot_dimension_numbers<[1], [0], [0], [1], [0, 0, 1, 1], [], []>} : vector<16x16xf32>, vector<16x8xf32>, vector<16x8xf32> -> vector<16x8xf32>
    %135 = tpu.concatenate %44, %74, %104, %134 in 1 : vector<16x8xf32>, vector<16x8xf32>, vector<16x8xf32>, vector<16x8xf32> -> vector<16x32xf32>
    %c0_51 = arith.constant 0 : index
    %c0_52 = arith.constant 0 : index
    %136 = vector.load %arg7[%c0_51, %c0_52] : memref<16x32xf32, #tpu.memory_space<vmem>>, vector<16x32xf32>
    tpu.vector_store %arg7[%c0_51, %c0_52], %135 {strides = array<i32>} : memref<16x32xf32, #tpu.memory_space<vmem>>, vector<16x32xf32>,
    return
  }
  func.func @transform_0(%arg0: i32) -> (i32, i32) {
    %c0_i32 = arith.constant 0 : i32
    %c0_i32_0 = arith.constant 0 : i32
    %c0_i32_1 = arith.constant 0 : i32
    return %c0_i32, %c0_i32_0 : i32, i32
  }
  func.func @transform_1(%arg0: i32) -> (i32, i32) {
    %c0_i32 = arith.constant 0 : i32
    %c0_i32_0 = arith.constant 0 : i32
    %c0_i32_1 = arith.constant 0 : i32
    return %c0_i32, %c0_i32_0 : i32, i32
  }
  func.func @transform_2(%arg0: i32) -> (i32, i32) {
    %c0_i32 = arith.constant 0 : i32
    %c0_i32_0 = arith.constant 0 : i32
    %c0_i32_1 = arith.constant 0 : i32
    return %c0_i32, %c0_i32_0 : i32, i32
  }
  func.func @transform_3(%arg0: i32) -> (i32, i32) {
    %c0_i32 = arith.constant 0 : i32
    %c0_i32_0 = arith.constant 0 : i32
    %c0_i32_1 = arith.constant 0 : i32
    return %c0_i32, %c0_i32_0 : i32, i32
  }
  func.func @transform_4(%arg0: i32) -> (i32, i32) {
    %c0_i32 = arith.constant 0 : i32
    %c0_i32_0 = arith.constant 0 : i32
    %c0_i32_1 = arith.constant 0 : i32
    return %c0_i32, %c0_i32_0 : i32, i32
  }
  func.func @transform_5(%arg0: i32) -> (i32, i32) {
    %c0_i32 = arith.constant 0 : i32
    %c0_i32_0 = arith.constant 0 : i32
    return %arg0, %c0_i32 : i32, i32
  }
  func.func @transform_6(%arg0: i32) -> (i32, i32) {
    %c0_i32 = arith.constant 0 : i32
    %c0_i32_0 = arith.constant 0 : i32
    return %arg0, %c0_i32 : i32, i32
  }
}

</mosaic_0001>

<bundles_post_ra>
// kernel: tpu_custom_call.1
= control target key start
LH: loop header
LB: loop body
LE: loop exit
PB: predicated region body
PF: predicated region fallthrough
CT: control target
= control target key end

     0   :  { %vm27_vm0 = vcmask 64512   ;;  %v1026_v4 = vmov 0.0   ;;  %s1240_s0 = inlined_call_operand.vmem [shape: f32[16,8], index: 0, kind: input, shape index: {}]   ;;  %s1241_s1 = inlined_call_operand.vmem [shape: f32[8,16], index: 1, kind: input, shape index: {}]   ;;  %s1242_s2 = inlined_call_operand.vmem [shape: f32[8,32], index: 2, kind: input, shape index: {}]   ;;  %s1243_s3 = inlined_call_operand.vmem [shape: f32[4,8], index: 3, kind: input, shape index: {}]   ;;  %s1244_s4 = inlined_call_operand.vmem [shape: f32[8,4], index: 4, kind: input, shape index: {}]   ;;  %s1245_s5 = inlined_call_operand.vmem [shape: f32[16,16], index: 5, kind: input, shape index: {}]   ;;  %s1246_s6 = inlined_call_operand.hbm [shape: f32[16,32], index: 6, kind: output, shape index: {}]  }
   0x1   :  { %v26_v0 = vld [vmem:[%s1242_s2] sm:$0xff]  ;;  %v25_v2 = vld [vmem:[%s1240_s0 + $0x8] sm:$0xff]  ;;  %913 = vmatprep.subr.mxu1 %v1026_v4 }
   0x2   :  { %v24_v1 = vld [vmem:[%s1240_s0] sm:$0xff]  ;;  %908 = vmatprep.subr.mxu0 %v26_v0 }
   0x3   :  { %910 = vmatprep.mubr.msk.f32.mxu0 %vm27_vm0, %v24_v1  ;;  %v188_v3 = vld [vmem:[%s1244_s4] sm:$0xff]  ;;  %909 = vmatpush3.msra.mxu0 %v26_v0 }
   0x4   :  { %v110_v5 = vld [vmem:[%s1241_s1] sm:$0xff] }
   0x5   :  { %11 = vsyncpa [#allocation3], 0  ;;  %911 = vmatmul.mubr.msk.f32.vlgmr.msra.gmra.mxu0 %vm27_vm0, %v25_v2  ;;  %918 = vmatprep.subr.mxu0 %v188_v3  ;;  %v109_v6 = vld [vmem:[%s1243_s3] sm:$0xf]  ;;  %vm1027_vm1 = vmmov 0   ;;  %v1028_v7 = vmov 1   ;;  %v284_v17 = vlaneseq }
   0x6   :  { %919 = vmatpush3.msra.mxu0 %v188_v3  ;;  %920 = vmatprep.mubr.msk.f32.mxu0 %vm27_vm0, %v24_v1  ;;  %v1029_v8 = vmov 0   ;;  %v1030_v15 = vmov 2   ;;  %v1031_v16 = vmov 3   ;;  %v1113_v24 = vld [vmem:[%s1245_s5 + $0x8] sm:$0xff]  ;;  %vm298_vm5 = vcmask 130048   ;;  %v1120_v33 = vld [vmem:[%s1245_s5] sm:$0xff] }
   0x7   :  { %914 = vmatpush3.msra.mxu1 %v110_v5  ;;  %915 = vmatprep.mubr.msk.f32.mxu1 %vm1027_vm1, %v1026_v4  ;;  %v285_v18 = vshrl.u32 %v284_v17, 7  ;;  %vm273_vm2 = vcmp.gt.f32.partialorder %v1113_v24, 0.0  ;;  %vm272_vm6 = vcmp.gt.f32.partialorder %v1120_v33, 0.0  ;;  %s1032_s5 = smov 120   ;;  %s1033_s8 = smov 112  }
   0x8   :  { %916 = vmatmul.mubr.msk.f32.vlgmr.msra.gmra.mxu1 %vm27_vm0, %v109_v6  ;;  %966 = vset.pattern.permute.xlu1 %v1028_v7  ;;  %s1034_s9 = smov 104   ;;  %s1035_s10 = smov 8  }
   0x9   :  { %921 = vmatmul.mubr.msk.f32.vlgmr.msra.gmra.mxu0 %vm27_vm0, %v25_v2  ;;  %965 = vset.pattern.permute.xlu0 %v1029_v8  ;;  %v418_v19 = vsub.s32 1, %v285_v18  ;;  %v286_v20 = vsub.s32 0, %v285_v18  ;;  %v557_v23 = vsub.s32 2, %v285_v18  ;;  %v694_v46 = vsub.s32 3, %v285_v18  ;;  %s1036_s11 = smov 16   ;;  %s1037_s12 = smov 24  }
   0xa   :  { %s1038_s13 = smov [#allocation2]  }
   0xb   :  { %s860_s14 = sshll.u32 %s1038_s13, 4  ;;  %s861_s14 = int_to_ptr.vmem [resolvable:$true] %s860_s14 }
   0xc   :  { %s1004_s15 = scalar_lea.vmem %s861_s14, 256  ;;  %p1009_p1 = scmp.lt.s32.totalorder %s861_s14, %s861_s14 }
   0xd   :  { %p1005_p0 = scmp.ne.s32.totalorder %s861_s14, %s1004_s15  ;;  %p1010_p2 = scmp.lt.s32.totalorder %s1004_s15, %s1004_s15 }
   0xf   :  { %p1011_p3 = por %p1010_p2, %p1009_p1 }
  0x11   :  { %p1012_p4 = pnand %p1011_p3, %p1005_p0 }
  0xc5   :  { %v1098_v9 = vpop.f32.mrf.mxu0 }
  0xc6   :  { %923 = vmatprep.subr.mxu1 %v1098_v9 }
  0xc7   :  { %v1101_v10 = vpop.f32.mrf.mxu0  ;;  %924 = vmatpush3.msra.mxu1 %v1098_v9 }
  0xc8   :  { %925 = vmatprep.subr.mxu1 %v1101_v10  ;;  %v1105_v11 = vpop.f32.mrf.mxu1 }
  0xc9   :  { %v922_v12 = vpop.f32.mrf.mxu0  ;;  %926 = vmatpush3.msra.mxu1 %v1101_v10  ;;  %v419_v21 = vrot.slane %v1105_v11, %v418_v19  ;;  %v287_v22 = vrot.slane %v1105_v11, %v286_v20  ;;  %v558_v29 = vrot.slane %v1105_v11, %v557_v23  ;;  %v695_v57 = vrot.slane %v1105_v11, %v694_v46 }
  0xca   :  { %413 = vperm.xlu1 %966, %v922_v12   ;;  %281 = vperm.xlu0 %965, %v922_v12   ;;  %v917_v13 = vpop.f32.mrf.mxu1 }
  0xcb   :  { %v261_v14 = vpop.f32.mrf.mxu0 }
  0xce   :  { %967 = vset.pattern.permute.xlu1 %v1030_v15  ;;  %276 = vperm.xlu0 %965, %v261_v14  }
  0xcf   :  { %552 = vperm.xlu1 %967, %v922_v12  }
  0xd2   :  { %969 = vset.pattern.permute.xlu0 %v1030_v15 }
  0xd3   :  { %968 = vset.pattern.permute.xlu1 %v1028_v7  ;;  %548 = vperm.xlu0 %969, %v261_v14  }
  0xd4   :  { %409 = vperm.xlu1 %968, %v261_v14  }
  0xd7   :  { %971 = vset.pattern.permute.xlu0 %v1031_v16 }
  0xd8   :  { %970 = vset.pattern.permute.xlu1 %v1031_v16  ;;  %689 = vperm.xlu0 %971, %v922_v12  }
  0xd9   :  { %685 = vperm.xlu1 %970, %v261_v14  }
 0x145   :  { %v414_v25 = vpop.permute.xlu1 %413  ;;  %v282_v26 = vpop.permute.xlu0 %281 }
 0x146   :  { %v421_v27 = vadd.f32 %v419_v21, %v414_v25  ;;  %v289_v28 = vadd.f32 %v287_v22, %v282_v26 }
 0x148   :  { %v425_v30 = vmul.f32 0.01, %v421_v27  ;;  %v293_v31 = vmul.f32 0.01, %v289_v28  ;;  %vm291_vm3 = vcmp.gt.f32.partialorder %v289_v28, 0.0  ;;  %vm423_vm4 = vcmp.gt.f32.partialorder %v421_v27, 0.0 }
 0x149   :  { %v277_v32 = vpop.permute.xlu0 %276 }
 0x14a   :  { %v288_v34 = vadd.f32 %v287_v22, %v277_v32  ;;  %v553_v35 = vpop.permute.xlu1 %552  ;;  %v295_v36 = vsel %vm291_vm3, %v289_v28, %v293_v31  ;;  %v427_v37 = vsel %vm423_vm4, %v421_v27, %v425_v30 }
 0x14b   :  { %v560_v38 = vadd.f32 %v558_v29, %v553_v35  ;;  %v297_v39 = vsel %vm273_vm2, %v295_v36, -1e+30  ;;  %v429_v43 = vsel %vm273_vm2, %v427_v37, -1e+30 }
 0x14c   :  { %v292_v40 = vmul.f32 0.01, %v288_v34  ;;  %v302_v41 = vsel %vm298_vm5, %v297_v39, -inf  ;;  %vm290_vm7 = vcmp.gt.f32.partialorder %v288_v34, 0.0  ;;  %v433_v52 = vsel %vm298_vm5, %v429_v43, -inf }
 0x14d   :  { %v564_v42 = vmul.f32 0.01, %v560_v38  ;;  %303 = vmax.xlane.f32.xlu0 %v302_v41  ;;  %vm562_vm8 = vcmp.gt.f32.partialorder %v560_v38, 0.0 }
 0x14e   :  { %v549_v44 = vpop.permute.xlu0 %548  ;;  %v294_v45 = vsel %vm290_vm7, %v288_v34, %v292_v40  ;;  %vm849_vm7 = vcmask 195584  }
 0x14f   :  { %v559_v47 = vadd.f32 %v558_v29, %v549_v44  ;;  %v410_v48 = vpop.permute.xlu1 %409  ;;  %v296_v49 = vsel %vm272_vm6, %v294_v45, -1e+30  ;;  %v566_v50 = vsel %vm562_vm8, %v560_v38, %v564_v42  ;;  %vm852_vm8 = vcmask 261120  }
 0x150   :  { %v420_v51 = vadd.f32 %v419_v21, %v410_v48  ;;  %v299_v53 = vsel %vm298_vm5, %v296_v49, -inf  ;;  %v568_v55 = vsel %vm273_vm2, %v566_v50, -1e+30 }
 0x151   :  { %v563_v54 = vmul.f32 0.01, %v559_v47  ;;  %434 = vmax.xlane.f32.xlu0 %v433_v52  ;;  %300 = vmax.xlane.f32.xlu1 %v299_v53  ;;  %vm561_vm9 = vcmp.gt.f32.partialorder %v559_v47, 0.0  ;;  %v572_v61 = vsel %vm298_vm5, %v568_v55, -inf }
 0x152   :  { %v424_v56 = vmul.f32 0.01, %v420_v51  ;;  %vm422_vm10 = vcmp.gt.f32.partialorder %v420_v51, 0.0 }
 0x153   :  { %v690_v58 = vpop.permute.xlu0 %689  ;;  %v565_v63 = vsel %vm561_vm9, %v559_v47, %v563_v54 }
 0x154   :  { %v697_v59 = vadd.f32 %v695_v57, %v690_v58  ;;  %v686_v60 = vpop.permute.xlu1 %685  ;;  %v426_v62 = vsel %vm422_vm10, %v420_v51, %v424_v56  ;;  %v567_v5 = vsel %vm272_vm6, %v565_v63, -1e+30 }
 0x155   :  { %v696_v0 = vadd.f32 %v695_v57, %v686_v60  ;;  %573 = vmax.xlane.f32.xlu0 %v572_v61  ;;  %v428_v1 = vsel %vm272_vm6, %v426_v62, -1e+30  ;;  %v569_v11 = vsel %vm298_vm5, %v567_v5, -inf }
 0x156   :  { %v701_v2 = vmul.f32 0.01, %v697_v59  ;;  %v430_v3 = vsel %vm298_vm5, %v428_v1, -inf  ;;  %vm699_vm11 = vcmp.gt.f32.partialorder %v697_v59, 0.0 }
 0x157   :  { %v700_v4 = vmul.f32 0.01, %v696_v0  ;;  %431 = vmax.xlane.f32.xlu1 %v430_v3  ;;  %vm698_vm12 = vcmp.gt.f32.partialorder %v696_v0, 0.0 }
 0x158   :  { %v703_v6 = vsel %vm699_vm11, %v697_v59, %v701_v2 }
 0x159   :  { %v705_v7 = vsel %vm273_vm2, %v703_v6, -1e+30  ;;  %v702_v8 = vsel %vm698_vm12, %v696_v0, %v700_v4 }
 0x15a   :  { %v709_v12 = vsel %vm298_vm5, %v705_v7, -inf  ;;  %v704_v13 = vsel %vm272_vm6, %v702_v8, -1e+30 }
 0x15b   :  { %570 = vmax.xlane.f32.xlu1 %v569_v11  ;;  %710 = vmax.xlane.f32.xlu0 %v709_v12  ;;  %v706_v14 = vsel %vm298_vm5, %v704_v13, -inf }
 0x15f   :  { %707 = vmax.xlane.f32.xlu1 %v706_v14 }
 0x170   :  { %462 = vrot.lane.b32.xlu1 %v1098_v9, %s1032_s5 }
 0x171   :  { %460 = vrot.lane.b32.xlu0 %v1101_v10, %s1032_s5 }
 0x174   :  { %599 = vrot.lane.b32.xlu1 %v1098_v9, %s1033_s8 }
 0x178   :  { %736 = vrot.lane.b32.xlu1 %v1098_v9, %s1034_s9 }
 0x1d6   :  { %v304_v15 = vpop.xlane.xlu0 %303 }
 0x1d7   :  { %v306_v16 = vsub.f32 %v297_v39, %v304_v15 }
 0x1d9   :  { %v309_v17 = vmul.f32 1.442695, %v306_v16 }
 0x1da   :  { %v301_v18 = vpop.xlane.xlu1 %300  ;;  %v435_v19 = vpop.xlane.xlu0 %434 }
 0x1db   :  { %972 = vpow2.f32 %v309_v17  ;;  %v305_v20 = vsub.f32 %v296_v49, %v301_v18  ;;  %v437_v21 = vsub.f32 %v429_v43, %v435_v19 }
 0x1dd   :  { %v307_v22 = vmul.f32 1.442695, %v305_v20  ;;  %v440_v23 = vmul.f32 1.442695, %v437_v21 }
 0x1de   :  { %v574_v25 = vpop.xlane.xlu0 %573 }
 0x1df   :  { %974 = vpow2.f32 %v307_v22  ;;  %v576_v26 = vsub.f32 %v568_v55, %v574_v25 }
 0x1e0   :  { %976 = vpow2.f32 %v440_v23  ;;  %v432_v27 = vpop.xlane.xlu1 %431 }
 0x1e1   :  { %v579_v28 = vmul.f32 1.442695, %v576_v26  ;;  %v436_v29 = vsub.f32 %v428_v1, %v432_v27 }
 0x1e3   :  { %978 = vpow2.f32 %v579_v28  ;;  %v438_v30 = vmul.f32 1.442695, %v436_v29 }
 0x1e4   :  { %v571_v9 = vpop.xlane.xlu1 %570  ;;  %v711_v31 = vpop.xlane.xlu0 %710 }
 0x1e5   :  { %980 = vpow2.f32 %v438_v30  ;;  %v575_v32 = vsub.f32 %v567_v5, %v571_v9  ;;  %v713_v34 = vsub.f32 %v705_v7, %v711_v31 }
 0x1e7   :  { %v577_v35 = vmul.f32 1.442695, %v575_v32  ;;  %v716_v36 = vmul.f32 1.442695, %v713_v34 }
 0x1e8   :  { %v973_v37 = vpop.eup %972  ;;  %v708_v38 = vpop.xlane.xlu1 %707 }
 0x1e9   :  { %982 = vpow2.f32 %v577_v35  ;;  %v712_v39 = vsub.f32 %v704_v13, %v708_v38  ;;  %v1156_v40 = vsel %vm273_vm2, %v973_v37, 0.0  ;;  %v461_v47 = vpop.permute.xlu0 %460 }
 0x1ea   :  { %984 = vpow2.f32 %v716_v36  ;;  %v316_v41 = vsel %vm298_vm5, %v1156_v40, 0.0 }
 0x1eb   :  { %v714_v42 = vmul.f32 1.442695, %v712_v39  ;;  %317 = vadd.xlane.f32.xlu0 %v316_v41 }
 0x1ec   :  { %v975_v43 = vpop.eup %974  ;;  %v463_v44 = vpop.permute.xlu1 %462 }
 0x1ed   :  { %v977_v45 = vpop.eup %976  ;;  %986 = vpow2.f32 %v714_v42  ;;  %930 = vmatprep.subr.mxu0 %v463_v44  ;;  %v1162_v46 = vsel %vm272_vm6, %v975_v43, 0.0 }
 0x1ee   :  { %931 = vmatpush3.msra.mxu0 %v463_v44  ;;  %v313_v48 = vsel %vm298_vm5, %v1162_v46, 0.0  ;;  %v1168_v49 = vsel %vm273_vm2, %v977_v45, 0.0 }
 0x1ef   :  { %314 = vadd.xlane.f32.xlu1 %v313_v48  ;;  %v447_v50 = vsel %vm298_vm5, %v1168_v49, 0.0  ;;  %932 = vmatprep.subr.mxu0 %v461_v47 }
 0x1f0   :  { %v979_v51 = vpop.eup %978  ;;  %448 = vadd.xlane.f32.xlu0 %v447_v50  ;;  %v1172_v52 = vpop.permute.xlu1 %599  ;;  %933 = vmatpush3.msra.mxu0 %v461_v47 }
 0x1f1   :  { %937 = vmatprep.subr.mxu1 %v1172_v52  ;;  %v1177_v53 = vsel %vm273_vm2, %v979_v51, 0.0 }
 0x1f2   :  { %v981_v54 = vpop.eup %980  ;;  %v586_v55 = vsel %vm298_vm5, %v1177_v53, 0.0 }
 0x1f3   :  { %v1183_v56 = vsel %vm272_vm6, %v981_v54, 0.0 }
 0x1f4   :  { %587 = vadd.xlane.f32.xlu0 %v586_v55  ;;  %v1185_v57 = vpop.permute.xlu1 %736  ;;  %v444_v58 = vsel %vm298_vm5, %v1183_v56, 0.0 }
 0x1f5   :  { %445 = vadd.xlane.f32.xlu1 %v444_v58  ;;  %944 = vmatprep.subr.mxu0 %v1185_v57 }
 0x1f6   :  { %v983_v59 = vpop.eup %982 }
 0x1f7   :  { %v985_v60 = vpop.eup %984  ;;  %v1192_v61 = vsel %vm272_vm6, %v983_v59, 0.0 }
 0x1f8   :  { %v583_v62 = vsel %vm298_vm5, %v1192_v61, 0.0  ;;  %v1198_v63 = vsel %vm273_vm2, %v985_v60, 0.0 }
 0x1f9   :  { %584 = vadd.xlane.f32.xlu1 %v583_v62  ;;  %v723_v0 = vsel %vm298_vm5, %v1198_v63, 0.0 }
 0x1fa   :  { %v987_v1 = vpop.eup %986  ;;  %724 = vadd.xlane.f32.xlu0 %v723_v0 }
 0x1fb   :  { %v1204_v2 = vsel %vm272_vm6, %v987_v1, 0.0 }
 0x1fc   :  { %v720_v3 = vsel %vm298_vm5, %v1204_v2, 0.0 }
 0x1fd   :  { %721 = vadd.xlane.f32.xlu1 %v720_v3 }
 0x20e   :  { %734 = vrot.lane.b32.xlu1 %v1101_v10, %s1034_s9 }
 0x210   :  { %597 = vrot.lane.b32.xlu0 %v1101_v10, %s1033_s8 }
 0x274   :  { %v318_v24 = vpop.xlane.xlu0 %317 }
 0x275   :  { %vm320_vm13 = vcmp.eq.f32.partialorder %v318_v24, 0.0 }
 0x276   :  { %v322_v4 = vsel %vm320_vm13, 1.0, %v318_v24 }
 0x277   :  { %988 = vrcp.f32 %v322_v4 }
 0x278   :  { %v315_v5 = vpop.xlane.xlu1 %314 }
 0x279   :  { %vm319_vm14 = vcmp.eq.f32.partialorder %v315_v5, 0.0  ;;  %v449_v6 = vpop.xlane.xlu0 %448 }
 0x27a   :  { %v321_v33 = vsel %vm319_vm14, 1.0, %v315_v5  ;;  %vm451_vm15 = vcmp.eq.f32.partialorder %v449_v6, 0.0 }
 0x27b   :  { %990 = vrcp.f32 %v321_v33  ;;  %v453_v7 = vsel %vm451_vm15, 1.0, %v449_v6 }
 0x27c   :  { %992 = vrcp.f32 %v453_v7 }
 0x27d   :  { %v588_v8 = vpop.xlane.xlu0 %587 }
 0x27e   :  { %vm590_vm1 = vcmp.eq.f32.partialorder %v588_v8, 0.0  ;;  %v446_v11 = vpop.xlane.xlu1 %445 }
 0x27f   :  { %vm450_vm2 = vcmp.eq.f32.partialorder %v446_v11, 0.0  ;;  %v592_v13 = vsel %vm590_vm1, 1.0, %v588_v8 }
 0x280   :  { %v452_v12 = vsel %vm450_vm2, 1.0, %v446_v11 }
 0x281   :  { %994 = vrcp.f32 %v452_v12 }
 0x282   :  { %v585_v10 = vpop.xlane.xlu1 %584  ;;  %996 = vrcp.f32 %v592_v13 }
 0x283   :  { %vm589_vm3 = vcmp.eq.f32.partialorder %v585_v10, 0.0  ;;  %v725_v14 = vpop.xlane.xlu0 %724 }
 0x284   :  { %v591_v15 = vsel %vm589_vm3, 1.0, %v585_v10  ;;  %vm727_vm4 = vcmp.eq.f32.partialorder %v725_v14, 0.0  ;;  %v989_v18 = vpop.eup %988 }
 0x285   :  { %998 = vrcp.f32 %v591_v15  ;;  %v729_v16 = vsel %vm727_vm4, 1.0, %v725_v14  ;;  %v326_v22 = vmul.f32 %v989_v18, %v1156_v40 }
 0x286   :  { %v722_v17 = vpop.xlane.xlu1 %721  ;;  %1000 = vrcp.f32 %v729_v16 }
 0x287   :  { %vm726_vm6 = vcmp.eq.f32.partialorder %v722_v17, 0.0  ;;  %v598_v25 = vpop.permute.xlu0 %597 }
 0x288   :  { %v991_v19 = vpop.eup %990  ;;  %v728_v20 = vsel %vm726_vm6, 1.0, %v722_v17 }
 0x289   :  { %1002 = vrcp.f32 %v728_v20  ;;  %v325_v21 = vmul.f32 %v991_v19, %v1162_v46  ;;  %v993_v23 = vpop.eup %992 }
 0x28a   :  { %v457_v28 = vmul.f32 %v993_v23, %v1168_v49  ;;  %v735_v9 = vpop.permute.xlu1 %734 }
 0x28b   :  { %927 = vmatprep.mubr.msk.f32.mxu1 %vm298_vm5, %v325_v21 }
 0x28c   :  { %928 = vmatmul.mubr.msk.f32.vlgmr.msra.gmra.mxu1 %vm298_vm5, %v326_v22 }
 0x28d   :  { %938 = vmatpush3.msra.mxu1 %v1172_v52 }
 0x28e   :  { %v995_v26 = vpop.eup %994  ;;  %939 = vmatprep.subr.mxu1 %v598_v25 }
 0x28f   :  { %940 = vmatpush3.msra.mxu1 %v598_v25  ;;  %v456_v27 = vmul.f32 %v995_v26, %v1183_v56  ;;  %v997_v29 = vpop.eup %996 }
 0x290   :  { %v596_v32 = vmul.f32 %v997_v29, %v1177_v53 }
 0x291   :  { %934 = vmatprep.mubr.msk.f32.mxu0 %vm298_vm5, %v456_v27 }
 0x292   :  { %v999_v30 = vpop.eup %998  ;;  %935 = vmatmul.mubr.msk.f32.vlgmr.msra.gmra.mxu0 %vm298_vm5, %v457_v28 }
 0x293   :  { %945 = vmatpush3.msra.mxu0 %v1185_v57  ;;  %v595_v31 = vmul.f32 %v999_v30, %v1192_v61  ;;  %v1001_v34 = vpop.eup %1000 }
 0x294   :  { %946 = vmatprep.subr.mxu0 %v735_v9  ;;  %v733_v37 = vmul.f32 %v1001_v34, %v1198_v63 }
 0x295   :  { %947 = vmatpush3.msra.mxu0 %v735_v9  ;;  %941 = vmatprep.mubr.msk.f32.mxu1 %vm298_vm5, %v595_v31 }
 0x296   :  { %v1003_v35 = vpop.eup %1002  ;;  %942 = vmatmul.mubr.msk.f32.vlgmr.msra.gmra.mxu1 %vm298_vm5, %v596_v32 }
 0x297   :  { %v732_v36 = vmul.f32 %v1003_v35, %v1204_v2 }
 0x299   :  { %948 = vmatprep.mubr.msk.f32.mxu0 %vm298_vm5, %v732_v36 }
 0x29a   :  { %949 = vmatmul.mubr.msk.f32.vlgmr.msra.gmra.mxu0 %vm298_vm5, %v733_v37 }
 0x34c   :  { %v929_v38 = vpop.f32.mrf.mxu1 }
 0x34e   :  { %v399_v40 = vpop.f32.mrf.mxu1 }
 0x352   :  { %v936_v39 = vpop.f32.mrf.mxu0 }
 0x353   :  { %825 = vrot.lane.b32.xlu1 %v936_v39, %s1035_s10 }
 0x354   :  { %v538_v41 = vpop.f32.mrf.mxu0 }
 0x355   :  { %823 = vrot.lane.b32.xlu0 %v538_v41, %s1035_s10 }
 0x356   :  { %v943_v42 = vpop.f32.mrf.mxu1 }
 0x357   :  { %833 = vrot.lane.b32.xlu1 %v943_v42, %s1036_s11 }
 0x358   :  { %v675_v43 = vpop.f32.mrf.mxu1 }
 0x359   :  { %831 = vrot.lane.b32.xlu0 %v675_v43, %s1036_s11 }
 0x35a   :  { %v950_v44 = vpop.f32.mrf.mxu0 }
 0x35b   :  { %841 = vrot.lane.b32.xlu1 %v950_v44, %s1037_s12 }
 0x35c   :  { %v812_v45 = vpop.f32.mrf.mxu0 }
 0x35d   :  { %839 = vrot.lane.b32.xlu0 %v812_v45, %s1037_s12 }
 0x3c5   :  { %v826_v46 = vpop.permute.xlu1 %825 }
 0x3c6   :  { %v846_v50 = vsel %vm27_vm0, %v929_v38, %v826_v46 }
 0x3c7   :  { %v824_v47 = vpop.permute.xlu0 %823 }
 0x3c8   :  { %v845_v53 = vsel %vm27_vm0, %v399_v40, %v824_v47 }
 0x3c9   :  { %v834_v48 = vpop.permute.xlu1 %833 }
 0x3ca   :  { %v848_v51 = vsel %vm298_vm5, %v846_v50, %v834_v48 }
 0x3cb   :  { %v832_v49 = vpop.permute.xlu0 %831 }
 0x3cc   :  { %v847_v55 = vsel %vm298_vm5, %v845_v53, %v832_v49 }
 0x3cd   :  { %v842_v52 = vpop.permute.xlu1 %841 }
 0x3ce   :  { %v851_v54 = vsel %vm849_vm7, %v848_v51, %v842_v52 }
 0x3cf   :  { %854 = vst.msk [vmem:[#allocation2 + $0x8] sm:$0xff] %vm852_vm8, %v851_v54  ;;  %v840_v56 = vpop.permute.xlu0 %839 }
 0x3d0   :  { %v850_v57 = vsel %vm849_vm7, %v847_v55, %v840_v56 }
 0x3d1   :  { %853 = vst.msk [vmem:[#allocation2] sm:$0xff] %vm852_vm8, %v850_v57 }
 0x3d2   :  { %1015 = shalt.err (!%p1012_p4)
}
 0x3d3   :  { %s1039_s16 = smov 128  }
 0x3d4   :  { %866 = dma.vmem_to_hbm [thread:$0]  %s861_s14, 256, %s1246_s6, [#allocation3], %s1039_s16, %s1039_s16, %s1035_s10  }
 0x3d5   :  { %1024 = dma.done.wait [#allocation3], 256  }
 0x3d6   :  { %1025 = vsyncadd [#allocation3], 4294967040 }
 0x3d7   :  { %870 = vsyncpa [#allocation3], 1 }

</bundles_post_ra>
